<compile_context>
chip_gen: v7x
topology: tpu7x:2x2x1
jax: 0.10.0
libtpu: 0.0.40
codegen_flags: <defaults>
</compile_context>

<pallas_src>
import functools

import jax
import jax.numpy as jnp
from jax.experimental import pallas as pl
from jax.experimental.pallas import tpu as pltpu


def _round_up(x, m):
    return ((x + m - 1) // m) * m


def _hw_prefs():
    """(tm_pref, tn_pref, tk_pref, vmem_limit_bytes), conservative per TPU gen."""
    try:
        kind = jax.devices()[0].device_kind.lower()
    except Exception:
        kind = ""
    if ("v4" in kind) or ("v5" in kind) or ("v6" in kind):
        # 128 MiB VMEM parts: deeper K tiles, raised scoped-VMEM limit.
        return 512, 512, 2048, 64 * 1024 * 1024
    # v7x-safe default (64 MiB physical VMEM); ~10-18 MiB per-step footprint.
    return 512, 512, 1024, 32 * 1024 * 1024


def _pick_tile(d, pref, align):
    """Tile size (multiple of `align`, <= pref) for a dim already padded to a
    multiple of `align`. Single tile if it fits the preference; otherwise the
    largest candidate whose zero-padding waste is <= 1/16 of the padded extent,
    falling back to the minimum-waste candidate."""
    if d <= pref:
        return d
    best = None
    t = pref
    while t >= align:
        padded = _round_up(d, t)
        waste = padded - d
        if waste * 16 <= padded:
            return t                       # t descends -> largest acceptable
        key = (waste, -t)
        if best is None or key < best[0]:
            best = (key, t)
        t -= align
    return best[1]


# ---------------------------------------------------------------------------
# Kernels
# ---------------------------------------------------------------------------
def _quant_matmul_kernel(x_ref, w_ref, fcsf_ref, b_ref, psf_ref, out_ref, *,
                         bias_bit, exact_bf16_weights):
    """Tiled (x @ w_int) with the QuantLinear epilogue on the last K step.

    out_ref (f32) doubles as the accumulator: its block index ignores k, so it
    stays resident in VMEM across the K sweep.
    """
    k = pl.program_id(2)

    @pl.when(k == 0)
    def _init():
        out_ref[...] = jnp.zeros_like(out_ref)

    if exact_bf16_weights:
        # bf16 MXU path: integer weights (<=9 bit) are exact in bf16; the f32
        # activation is split into a bf16 hi/lo pair so full f32 fidelity is
        # preserved while the MXU runs its fast bf16 operand path.
        x = x_ref[...]                                    # (tm, tk) f32
        x_hi = x.astype(jnp.bfloat16)
        x_lo = (x - x_hi.astype(jnp.float32)).astype(jnp.bfloat16)
        w = w_ref[...].astype(jnp.bfloat16)               # int8/bf16 -> bf16 (exact)
        out_ref[...] += (
            jnp.dot(x_hi, w, preferred_element_type=jnp.float32)
            + jnp.dot(x_lo, w, preferred_element_type=jnp.float32))
    else:
        # >9-bit integer weights are not exact in bf16: keep the f32 MXU path.
        out_ref[...] += jnp.dot(x_ref[...], w_ref[...].astype(jnp.float32),
                                preferred_element_type=jnp.float32)

    @pl.when(k == pl.num_programs(2) - 1)
    def _finalize():
        n_b = float(2 ** (bias_bit - 1) - 1)
        prev_sf = psf_ref[0, 0]                           # scalar from SMEM
        fc_sf = fcsf_ref[...]                             # (1, tn) weight scales
        bias_sf = fc_sf * prev_sf                         # (1, tn)
        # Tiny (1, tn) runtime bias fake-quant (only thing depending on prev_sf).
        # Recomputed per output tile: caching it across the parallel M axis
        # would not be megacore-safe and its cost is negligible.
        b_int = jnp.clip(jnp.round(b_ref[...] / bias_sf), -n_b - 1.0, n_b)
        # Folded rescale: ((x/prev_sf) @ w_int + b_int) * bias_sf
        #              == (x @ w_int) * fc_sf + b_int * bias_sf
        out_ref[...] = out_ref[...] * fc_sf + b_int * bias_sf


def _plain_matmul_kernel(x_ref, w_ref, b_ref, out_ref):
    """quant_mode == 'none': plain F.linear, tiled, accumulate into out_ref."""
    k = pl.program_id(2)

    @pl.when(k == 0)
    def _init():
        out_ref[...] = jnp.zeros_like(out_ref)

    out_ref[...] += jnp.dot(x_ref[...], w_ref[...],
                            preferred_element_type=jnp.float32)

    @pl.when(k == pl.num_programs(2) - 1)
    def _finalize():
        out_ref[...] += b_ref[...]


# ---------------------------------------------------------------------------
# pallas_call wrappers (tiled grid, megacore semantics, no extra scratch)
# ---------------------------------------------------------------------------
def _quant_forward(x_pad, w_int_t, fcsf_row, b_row, prev_sf_2d, *, tm, tk, tn,
                   bias_bit, exact_bf16_weights, vmem_limit):
    mp, kp = x_pad.shape
    np_ = w_int_t.shape[1]
    grid = (mp // tm, np_ // tn, kp // tk)
    kernel = functools.partial(_quant_matmul_kernel, bias_bit=bias_bit,
                               exact_bf16_weights=exact_bf16_weights)
    cost = pl.CostEstimate(
        flops=(4 if exact_bf16_weights else 2) * mp * np_ * kp,
        transcendentals=0,
        bytes_accessed=int(x_pad.size * x_pad.dtype.itemsize
                           + w_int_t.size * w_int_t.dtype.itemsize
                           + mp * np_ * 4 + 2 * np_ * 4 + 4))
    return pl.pallas_call(
        kernel,
        out_shape=jax.ShapeDtypeStruct((mp, np_), jnp.float32),
        grid=grid,
        in_specs=[
            pl.BlockSpec((tm, tk), lambda i, j, k: (i, k)),      # x (f32)
            # TODO(synk): sweep pipeline_mode=pl.Buffered(3) on the weight spec
            #             if profiling shows the kernel is weight-DMA bound.
            pl.BlockSpec((tk, tn), lambda i, j, k: (k, j)),      # w_int.T (int8/bf16)
            pl.BlockSpec((1, tn), lambda i, j, k: (0, j)),       # fc scale row
            pl.BlockSpec((1, tn), lambda i, j, k: (0, j)),       # bias row
            pl.BlockSpec(memory_space=pltpu.MemorySpace.SMEM),   # prev_sf scalar
        ],
        out_specs=pl.BlockSpec((tm, tn), lambda i, j, k: (i, j)),
        compiler_params=pltpu.CompilerParams(
            dimension_semantics=("parallel", "parallel", "arbitrary"),
            vmem_limit_bytes=vmem_limit),
        cost_estimate=cost,
    )(x_pad, w_int_t, fcsf_row, b_row, prev_sf_2d)


def _plain_forward(x_pad, w_t, b_row, *, tm, tk, tn, vmem_limit):
    mp, kp = x_pad.shape
    np_ = w_t.shape[1]
    grid = (mp // tm, np_ // tn, kp // tk)
    cost = pl.CostEstimate(
        flops=2 * mp * np_ * kp,
        transcendentals=0,
        bytes_accessed=int((x_pad.size + w_t.size + mp * np_ + np_) * 4))
    return pl.pallas_call(
        _plain_matmul_kernel,
        out_shape=jax.ShapeDtypeStruct((mp, np_), jnp.float32),
        grid=grid,
        in_specs=[
            pl.BlockSpec((tm, tk), lambda i, j, k: (i, k)),
            pl.BlockSpec((tk, tn), lambda i, j, k: (k, j)),
            pl.BlockSpec((1, tn), lambda i, j, k: (0, j)),
        ],
        out_specs=pl.BlockSpec((tm, tn), lambda i, j, k: (i, j)),
        compiler_params=pltpu.CompilerParams(
            dimension_semantics=("parallel", "parallel", "arbitrary"),
            vmem_limit_bytes=vmem_limit),
        cost_estimate=cost,
    )(x_pad, w_t, b_row)


# ---------------------------------------------------------------------------
# Module wrapper mirroring the PyTorch QuantLinear forward semantics
# ---------------------------------------------------------------------------
class QuantLinear:
    def __init__(self, weight_bit, bias_bit=None, per_channel=False,
                 quant_mode='none'):
        if quant_mode == 'asymmetric':
            raise NotImplementedError('unsupported quant mode: asymmetric')
        if quant_mode not in ('none', 'symmetric'):
            raise ValueError('unknown quant mode: {}'.format(quant_mode))
        self.weight_bit = weight_bit
        self.bias_bit = bias_bit
        self.per_channel = per_channel
        self.quant_mode = quant_mode
        self.quantize_bias = bias_bit is not None
        self.percentile_mode = False
        (self._tm_pref, self._tn_pref,
         self._tk_pref, self._vmem_limit) = _hw_prefs()

    def set_param(self, in_features, out_features, weight, bias=None):
        self.in_features = int(in_features)
        self.out_features = int(out_features)
        w = jnp.asarray(weight, jnp.float32)                  # (O, I) torch layout
        self.weight = w
        self.bias = None if bias is None else jnp.asarray(bias, jnp.float32)

        k_al = _round_up(self.in_features, 128)
        n_al = _round_up(self.out_features, 128)
        tk = _pick_tile(k_al, self._tk_pref, 128)
        tn = _pick_tile(n_al, self._tn_pref, 128)
        self._tk, self._tn = tk, tn
        kp = _round_up(k_al, tk)
        np_ = _round_up(n_al, tn)
        self._kp, self._np = kp, np_

        b = (self.bias if self.bias is not None
             else jnp.zeros((self.out_features,), jnp.float32))
        self._b_row = (jnp.zeros((1, np_), jnp.float32)
                       .at[0, :self.out_features].set(b))

        if self.quant_mode == 'symmetric':
            # ---- hoisted weight quantization (one-time, full-K reduction) ----
            n_w = float(2 ** (self.weight_bit - 1) - 1)
            if self.per_channel:
                w_min = jnp.min(w, axis=1)                    # (O,)
                w_max = jnp.max(w, axis=1)
            else:
                w_min = jnp.min(w).reshape(1)                 # (1,)
                w_max = jnp.max(w).reshape(1)
            fc_sf = jnp.maximum(jnp.maximum(jnp.abs(w_min), jnp.abs(w_max)),
                                1e-8) / n_w
            w_int = jnp.clip(jnp.round(w / fc_sf[:, None]), -n_w - 1.0, n_w)
            self.fc_scaling_factor = fc_sf                    # (O,) or (1,)
            self.weight_integer = w_int                       # (O, I) f32

            # Canonical kernel layout: transposed, padded, narrowest exact dtype.
            self._exact_bf16 = self.weight_bit <= 9
            if self.weight_bit <= 8:
                w_dtype = jnp.int8        # halves weight HBM traffic
            elif self.weight_bit <= 9:
                w_dtype = jnp.bfloat16    # still exact integer storage
            else:
                w_dtype = jnp.float32     # f32 MXU fallback path
            self._w_int_t = (jnp.zeros((kp, np_), w_dtype)
                             .at[:self.in_features, :self.out_features]
                             .set(w_int.T.astype(w_dtype)))
            self._fcsf_row = (jnp.ones((1, np_), jnp.float32)
                              .at[0, :self.out_features]
                              .set(jnp.broadcast_to(fc_sf, (self.out_features,))))
        else:
            self._w_t = (jnp.zeros((kp, np_), jnp.float32)
                         .at[:self.in_features, :self.out_features].set(w.T))

    def __call__(self, x, prev_act_scaling_factor=None):
        x = jnp.asarray(x, jnp.float32)
        m, kdim = x.shape
        assert kdim == self.in_features
        m8 = _round_up(max(m, 1), 8)
        tm = _pick_tile(m8, self._tm_pref, 8)
        mp = _round_up(m8, tm)
        if (mp, self._kp) != (m, kdim):
            x_pad = jnp.pad(x, ((0, mp - m), (0, self._kp - kdim)))
        else:
            x_pad = x                                       # no per-call copy

        if self.quant_mode == 'none':
            out = _plain_forward(x_pad, self._w_t, self._b_row,
                                 tm=tm, tk=self._tk, tn=self._tn,
                                 vmem_limit=self._vmem_limit)
            return out[:m, :self.out_features], None

        assert (prev_act_scaling_factor is not None
                and prev_act_scaling_factor.shape == (1,))
        prev_sf = jnp.asarray(prev_act_scaling_factor, jnp.float32)
        bias_bit = self.bias_bit if self.bias_bit is not None else 32
        out = _quant_forward(x_pad, self._w_int_t, self._fcsf_row, self._b_row,
                             prev_sf.reshape(1, 1),
                             tm=tm, tk=self._tk, tn=self._tn,
                             bias_bit=bias_bit,
                             exact_bf16_weights=self._exact_bf16,
                             vmem_limit=self._vmem_limit)
        bias_scaling_factor = self.fc_scaling_factor * prev_sf   # (O,) or (1,)
        return out[:m, :self.out_features], bias_scaling_factor


# ---------------------------------------------------------------------------
# Pure-JAX reference (mirrors the torch code path, (O, I) layout)
# ---------------------------------------------------------------------------
def _reference_symmetric(x, weight, bias, prev_sf, weight_bit, bias_bit,
                         per_channel):
    n_w = float(2 ** (weight_bit - 1) - 1)
    n_b = float(2 ** (bias_bit - 1) - 1)
    if per_channel:
        w_min = weight.min(axis=1)
        w_max = weight.max(axis=1)
    else:
        w_min = weight.min().reshape(1)
        w_max = weight.max().reshape(1)
    fc_sf = jnp.maximum(jnp.maximum(jnp.abs(w_min), jnp.abs(w_max)), 1e-8) / n_w
    w_int = jnp.clip(jnp.round(weight / fc_sf[:, None]), -n_w - 1.0, n_w)
    bias_sf = fc_sf * prev_sf
    b_int = jnp.clip(jnp.round(bias / bias_sf), -n_b - 1.0, n_b)
    x_int = x / prev_sf.reshape(1, -1)
    out = (jnp.dot(x_int, w_int.T, precision=jax.lax.Precision.HIGHEST)
           + b_int) * bias_sf
    return out, bias_sf


if __name__ == "__main__":
    key = jax.random.PRNGKey(0)
    kx, kw, kb, kx2, kw2, kb2, kx3, kw3, kb3 = jax.random.split(key, 9)

    # --- small shapes consistent with the module --------------------------
    B, IN, OUT = 8, 32, 16
    x = jax.random.normal(kx, (B, IN), jnp.float32)
    weight = jax.random.normal(kw, (OUT, IN), jnp.float32) * 0.1
    bias = jax.random.normal(kb, (OUT,), jnp.float32) * 0.1
    prev_sf = jnp.array([0.05], jnp.float32)

    # symmetric, per-channel
    qlin = QuantLinear(weight_bit=8, bias_bit=32, per_channel=True,
                       quant_mode='symmetric')
    qlin.set_param(IN, OUT, weight, bias)
    out, bsf = jax.block_until_ready(qlin(x, prev_sf))
    ref_out, ref_bsf = _reference_symmetric(x, weight, bias, prev_sf, 8, 32, True)
    assert out.shape == (B, OUT) and bsf.shape == (OUT,)
    assert jnp.allclose(out, ref_out, atol=1e-4, rtol=1e-4)
    assert jnp.allclose(bsf, ref_bsf, atol=1e-7, rtol=1e-6)

    # symmetric, per-tensor
    qlin_pt = QuantLinear(weight_bit=8, bias_bit=32, per_channel=False,
                          quant_mode='symmetric')
    qlin_pt.set_param(IN, OUT, weight, bias)
    out2, bsf2 = jax.block_until_ready(qlin_pt(x, prev_sf))
    ref_out2, ref_bsf2 = _reference_symmetric(x, weight, bias, prev_sf, 8, 32, False)
    assert out2.shape == (B, OUT) and bsf2.shape == (1,)
    assert jnp.allclose(out2, ref_out2, atol=1e-4, rtol=1e-4)
    assert jnp.allclose(bsf2, ref_bsf2, atol=1e-7, rtol=1e-6)

    # non-aligned dims -> exercises padding of K/N and non-128 tm
    B3, IN3, OUT3 = 24, 96, 272
    x3 = jax.random.normal(kx2, (B3, IN3), jnp.float32)
    w3 = jax.random.normal(kw2, (OUT3, IN3), jnp.float32) * 0.05
    b3 = jax.random.normal(kb2, (OUT3,), jnp.float32) * 0.05
    qlin3 = QuantLinear(weight_bit=8, bias_bit=32, per_channel=True,
                        quant_mode='symmetric')
    qlin3.set_param(IN3, OUT3, w3, b3)
    out3, bsf3 = jax.block_until_ready(qlin3(x3, prev_sf))
    ref_out3, ref_bsf3 = _reference_symmetric(x3, w3, b3, prev_sf, 8, 32, True)
    assert out3.shape == (B3, OUT3) and bsf3.shape == (OUT3,)
    assert jnp.allclose(out3, ref_out3, atol=1e-4, rtol=1e-4)
    assert jnp.allclose(bsf3, ref_bsf3, atol=1e-7, rtol=1e-6)

    # forced multi-tile grid at small shapes (exercises K accumulation into
    # out_ref, pl.when init/finalize, and M/N/K tiling) via tiny tile prefs.
    B4, IN4, OUT4 = 40, 320, 272
    x4 = jax.random.normal(kx3, (B4, IN4), jnp.float32)
    w4 = jax.random.normal(kw3, (OUT4, IN4), jnp.float32) * 0.05
    b4 = jax.random.normal(kb3, (OUT4,), jnp.float32) * 0.05
    qlin4 = QuantLinear(weight_bit=8, bias_bit=32, per_channel=True,
                        quant_mode='symmetric')
    qlin4._tm_pref, qlin4._tn_pref, qlin4._tk_pref = 16, 128, 128
    qlin4.set_param(IN4, OUT4, w4, b4)
    out4, bsf4 = jax.block_until_ready(qlin4(x4, prev_sf))
    ref_out4, ref_bsf4 = _reference_symmetric(x4, w4, b4, prev_sf, 8, 32, True)
    assert out4.shape == (B4, OUT4) and bsf4.shape == (OUT4,)
    assert jnp.allclose(out4, ref_out4, atol=1e-4, rtol=1e-4)
    assert jnp.allclose(bsf4, ref_bsf4, atol=1e-7, rtol=1e-6)

    # quant_mode == 'none' -> plain F.linear
    qlin_none = QuantLinear(weight_bit=8, quant_mode='none')
    qlin_none.set_param(IN, OUT, weight, bias)
    out5, none_sf = qlin_none(x)
    out5 = jax.block_until_ready(out5)
    assert none_sf is None
    ref5 = jnp.dot(x, weight.T, precision=jax.lax.Precision.HIGHEST) + bias
    assert jnp.allclose(out5, ref5, atol=1e-4, rtol=1e-4)

    print("KERNEL_OK")
</pallas_src>

<mosaic_0001>
module attributes {stable_mosaic.version = 11 : i64} {
  func.func @_quant_matmul_kernel(%arg0: i32, %arg1: i32, %arg2: i32, %arg3: memref<8x128xf32, #tpu.memory_space<vmem>>, %arg4: memref<128x128xi8, #tpu.memory_space<vmem>>, %arg5: memref<1x128xf32, #tpu.memory_space<vmem>>, %arg6: memref<1x128xf32, #tpu.memory_space<vmem>>, %arg7: memref<1x1xf32, #tpu.memory_space<smem>>, %arg8: memref<8x128xf32, #tpu.memory_space<vmem>>) attributes {dimension_semantics = [#tpu.dimension_semantics<parallel>, #tpu.dimension_semantics<parallel>, #tpu.dimension_semantics<arbitrary>], iteration_bounds = array<i64: 1, 1, 1>, scalar_prefetch = 0 : i64, scratch_operands = 0 : i64, tpu.core_type = #tpu.core_type<tc>, window_params = [{transform_indices = @transform_0, window_bounds = array<i64: 8, 128>}, {transform_indices = @transform_1, window_bounds = array<i64: 128, 128>}, {transform_indices = @transform_2, window_bounds = array<i64: 1, 128>}, {transform_indices = @transform_3, window_bounds = array<i64: 1, 128>}, {transform_indices = @transform_4, window_bounds = array<i64: 1, 1>}, {transform_indices = @transform_5, window_bounds = array<i64: 8, 128>}]} {
    %c0_i32 = arith.constant 0 : i32
    %0 = arith.cmpi eq, %arg2, %c0_i32 : i32
    %1 = arith.extui %0 : i1 to i32
    %c0_i32_0 = arith.constant 0 : i32
    %2 = arith.cmpi ne, %1, %c0_i32_0 : i32
    scf.if %2 {
      %cst_11 = arith.constant 0.000000e+00 : f32
      %19 = vector.broadcast %cst_11 : f32 to vector<8x128xf32>
      %c0_12 = arith.constant 0 : index
      %c0_13 = arith.constant 0 : index
      %20 = vector.load %arg8[%c0_12, %c0_13] : memref<8x128xf32, #tpu.memory_space<vmem>>, vector<8x128xf32>
      tpu.vector_store %arg8[%c0_12, %c0_13], %19 {strides = array<i32>} : memref<8x128xf32, #tpu.memory_space<vmem>>, vector<8x128xf32>,
    } else {
    }
    %c0 = arith.constant 0 : index
    %c0_1 = arith.constant 0 : index
    %3 = vector.load %arg3[%c0, %c0_1] : memref<8x128xf32, #tpu.memory_space<vmem>>, vector<8x128xf32>
    %4 = arith.truncf %3 : vector<8x128xf32> to vector<8x128xbf16>
    %5 = arith.extf %4 : vector<8x128xbf16> to vector<8x128xf32>
    %6 = arith.subf %3, %5 : vector<8x128xf32>
    %7 = arith.truncf %6 : vector<8x128xf32> to vector<8x128xbf16>
    %c0_2 = arith.constant 0 : index
    %c0_3 = arith.constant 0 : index
    %8 = vector.load %arg4[%c0_2, %c0_3] : memref<128x128xi8, #tpu.memory_space<vmem>>, vector<128x128xi8>
    %9 = arith.sitofp %8 : vector<128x128xi8> to vector<128x128xbf16>
    %c0_4 = arith.constant 0 : index
    %c0_5 = arith.constant 0 : index
    %10 = vector.load %arg8[%c0_4, %c0_5] : memref<8x128xf32, #tpu.memory_space<vmem>>, vector<8x128xf32>
    %cst = arith.constant dense<0.000000e+00> : vector<8x128xf32>
    %11 = tpu.matmul %4, %9, %cst {dimension_numbers = #tpu.dot_dimension_numbers<[1], [0], [0], [1], [0, 0, 1, 1], [], []>} : vector<8x128xbf16>, vector<128x128xbf16>, vector<8x128xf32> -> vector<8x128xf32>
    %cst_6 = arith.constant dense<0.000000e+00> : vector<8x128xf32>
    %12 = tpu.matmul %7, %9, %cst_6 {dimension_numbers = #tpu.dot_dimension_numbers<[1], [0], [0], [1], [0, 0, 1, 1], [], []>} : vector<8x128xbf16>, vector<128x128xbf16>, vector<8x128xf32> -> vector<8x128xf32>
    %13 = arith.addf %11, %12 : vector<8x128xf32>
    %14 = arith.addf %10, %13 : vector<8x128xf32>
    %c0_7 = arith.constant 0 : index
    %c0_8 = arith.constant 0 : index
    %15 = vector.load %arg8[%c0_7, %c0_8] : memref<8x128xf32, #tpu.memory_space<vmem>>, vector<8x128xf32>
    tpu.vector_store %arg8[%c0_7, %c0_8], %14 {strides = array<i32>} : memref<8x128xf32, #tpu.memory_space<vmem>>, vector<8x128xf32>,
    %c0_i32_9 = arith.constant 0 : i32
    %16 = arith.cmpi eq, %arg2, %c0_i32_9 : i32
    %17 = arith.extui %16 : i1 to i32
    %c0_i32_10 = arith.constant 0 : i32
    %18 = arith.cmpi ne, %17, %c0_i32_10 : i32
    scf.if %18 {
      %c0_11 = arith.constant 0 : index
      %c0_12 = arith.constant 0 : index
      %19 = memref.load %arg7[%c0_11, %c0_12] : memref<1x1xf32, #tpu.memory_space<smem>>
      %c0_13 = arith.constant 0 : index
      %c0_14 = arith.constant 0 : index
      %20 = vector.load %arg5[%c0_13, %c0_14] : memref<1x128xf32, #tpu.memory_space<vmem>>, vector<1x128xf32>
      %21 = vector.broadcast %19 : f32 to vector<1x128xf32>
      %22 = arith.mulf %20, %21 : vector<1x128xf32>
      %c0_15 = arith.constant 0 : index
      %c0_16 = arith.constant 0 : index
      %23 = vector.load %arg6[%c0_15, %c0_16] : memref<1x128xf32, #tpu.memory_space<vmem>>, vector<1x128xf32>
      %24 = arith.divf %23, %22 : vector<1x128xf32>
      %25 = math.roundeven %24 : vector<1x128xf32>
      %cst_17 = arith.constant -2.14748365E+9 : f32
      %cst_18 = arith.constant 2.14748365E+9 : f32
      %26 = vector.broadcast %cst_17 : f32 to vector<1x128xf32>
      %27 = arith.maximumf %26, %25 : vector<1x128xf32>
      %28 = vector.broadcast %cst_18 : f32 to vector<1x128xf32>
      %29 = arith.minimumf %28, %27 : vector<1x128xf32>
      %c0_19 = arith.constant 0 : index
      %c0_20 = arith.constant 0 : index
      %30 = vector.load %arg8[%c0_19, %c0_20] : memref<8x128xf32, #tpu.memory_space<vmem>>, vector<8x128xf32>
      %31 = vector.broadcast %20 : vector<1x128xf32> to vector<8x128xf32>
      %32 = arith.mulf %30, %31 : vector<8x128xf32>
      %33 = arith.mulf %29, %22 : vector<1x128xf32>
      %34 = vector.broadcast %33 : vector<1x128xf32> to vector<8x128xf32>
      %35 = arith.addf %32, %34 : vector<8x128xf32>
      %c0_21 = arith.constant 0 : index
      %c0_22 = arith.constant 0 : index
      %36 = vector.load %arg8[%c0_21, %c0_22] : memref<8x128xf32, #tpu.memory_space<vmem>>, vector<8x128xf32>
      tpu.vector_store %arg8[%c0_21, %c0_22], %35 {strides = array<i32>} : memref<8x128xf32, #tpu.memory_space<vmem>>, vector<8x128xf32>,
    } else {
    }
    return
  }
  func.func @transform_0(%arg0: i32, %arg1: i32, %arg2: i32) -> (i32, i32) {
    %c0_i32 = arith.constant 0 : i32
    return %arg0, %arg2 : i32, i32
  }
  func.func @transform_1(%arg0: i32, %arg1: i32, %arg2: i32) -> (i32, i32) {
    %c0_i32 = arith.constant 0 : i32
    return %arg2, %arg1 : i32, i32
  }
  func.func @transform_2(%arg0: i32, %arg1: i32, %arg2: i32) -> (i32, i32) {
    %c0_i32 = arith.constant 0 : i32
    %c0_i32_0 = arith.constant 0 : i32
    return %c0_i32, %arg1 : i32, i32
  }
  func.func @transform_3(%arg0: i32, %arg1: i32, %arg2: i32) -> (i32, i32) {
    %c0_i32 = arith.constant 0 : i32
    %c0_i32_0 = arith.constant 0 : i32
    return %c0_i32, %arg1 : i32, i32
  }
  func.func @transform_4(%arg0: i32, %arg1: i32, %arg2: i32) -> (i32, i32) {
    %c0_i32 = arith.constant 0 : i32
    %c0_i32_0 = arith.constant 0 : i32
    %c0_i32_1 = arith.constant 0 : i32
    return %c0_i32, %c0_i32_0 : i32, i32
  }
  func.func @transform_5(%arg0: i32, %arg1: i32, %arg2: i32) -> (i32, i32) {
    %c0_i32 = arith.constant 0 : i32
    return %arg0, %arg1 : i32, i32
  }
}

</mosaic_0001>

<bundles_post_ra>
// kernel: tpu_custom_call.1
= control target key start
LH: loop header
LB: loop body
LE: loop exit
PB: predicated region body
PF: predicated region fallthrough
CT: control target
= control target key end

     0   :  { %11 = vsyncpa [#allocation4], 0  ;;  %s430_s0 = inlined_call_operand.hbm [shape: f32[8,128], index: 0, kind: input, shape index: {}]   ;;  %s431_s1 = inlined_call_operand.hbm [shape: s8[128,128], index: 1, kind: input, shape index: {}]   ;;  %s432_s2 = inlined_call_operand.vmem [shape: f32[1,128], index: 2, kind: input, shape index: {}]   ;;  %s433_s3 = inlined_call_operand.vmem [shape: f32[1,128], index: 3, kind: input, shape index: {}]   ;;  %s434_s4 = inlined_call_operand.<no memory space> [shape: f32[1,1], index: 4, kind: input, shape index: {}]   ;;  %s435_s5 = inlined_call_operand.hbm [shape: f32[8,128], index: 5, kind: output, shape index: {}]  }
   0x1   :  { %12 = vsyncpa [#allocation7], 0 }
   0x2   :  { %13 = vsyncpa [#allocation5], 0  ;;  %s341_s18 = smov [#allocation3]   ;;  %s342_s20 = smov [#allocation6]  }
   0x3   :  { %s20_s19 = sshll.u32 %s341_s18, 4  ;;  %s29_s21 = sshll.u32 %s342_s20, 4  ;;  %s21_s19 = int_to_ptr.vmem [resolvable:$true] %s20_s19  ;;  %s378_s21 = int_to_ptr.vmem [resolvable:$true] %s29_s21 }
   0x4   :  { %s269_s24 = scalar_lea.hbm %s430_s0, 128 }
   0x5   :  { %p270_p0 = scmp.ne.s32.totalorder %s430_s0, %s269_s24  ;;  %p273_p1 = scmp.lt.u32.totalorder %s269_s24, %s430_s0 }
   0x7   :  { %p275_p2 = pnand %p273_p1, %p270_p0 }
   0x9   :  { %278 = shalt.err (!%p275_p2)
}
   0xa   :  { %s279_s29 = scalar_lea.vmem %s21_s19, 128  ;;  %p284_p4 = scmp.lt.s32.totalorder %s21_s19, %s21_s19 }
   0xb   :  { %p280_p3 = scmp.ne.s32.totalorder %s21_s19, %s279_s29  ;;  %p285_p5 = scmp.lt.s32.totalorder %s279_s29, %s279_s29 }
   0xd   :  { %p286_p6 = por %p285_p5, %p284_p4 }
   0xf   :  { %p287_p7 = pnand %p286_p6, %p280_p3 }
  0x11   :  { %290 = shalt.err (!%p287_p7)
}
  0x12   :  { %23 = dma.hbm_to_vmem [thread:$0]  %s430_s0, 128, %s21_s19, [#allocation4]  }
  0x13   :  { %s291_s9 = scalar_lea.hbm %s431_s1, 512 }
  0x14   :  { %p292_p8 = scmp.ne.s32.totalorder %s431_s1, %s291_s9  ;;  %p295_p9 = scmp.lt.u32.totalorder %s291_s9, %s431_s1 }
  0x16   :  { %p297_p10 = pnand %p295_p9, %p292_p8 }
  0x18   :  { %300 = shalt.err (!%p297_p10)
}
  0x19   :  { %s301_s14 = scalar_lea.vmem %s378_s21, 512  ;;  %p306_p12 = scmp.lt.s32.totalorder %s378_s21, %s378_s21 }
  0x1a   :  { %p302_p11 = scmp.ne.s32.totalorder %s378_s21, %s301_s14  ;;  %p307_p13 = scmp.lt.s32.totalorder %s301_s14, %s301_s14 }
  0x1c   :  { %p308_p0 = por %p307_p13, %p306_p12 }
  0x1e   :  { %p309_p1 = pnand %p308_p0, %p302_p11 }
  0x20   :  { %312 = shalt.err (!%p309_p1)
}
  0x21   :  { %s343_s0 = smov 128   ;;  %s344_s15 = smov 8  }
  0x22   :  { %35 = dma.hbm_to_vmem [thread:$0]  %s431_s1, 512, %s378_s21, [#allocation7], %s343_s0, %s343_s0, %s344_s15  }
  0x23   :  { %335 = dma.done.wait [#allocation4], 128  }
  0x24   :  { %336 = vsyncadd [#allocation4], 4294967168 }
  0x25   :  { %337 = dma.done.wait [#allocation7], 512  }
  0x26   :  { %338 = vsyncadd [#allocation7], 4294966784  ;;  %v345_v0 = vmov 0.0   ;;  %vm346_vm0 = vmmov 0   ;;  %v59_v1 = vld [vmem:[#allocation6] sm:$0xff]  ;;  %v60_v4 = vld [vmem:[#allocation6 + $0x8] sm:$0xff]  ;;  %v159_v19 = vstv %s434_s4  ;;  %v169_v24 = vlaneseq }
  0x27   :  { %219 = vmatprep.subr.bf16.mxu0 %v345_v0  ;;  %239 = vmatprep.subr.bf16.mxu1 %v345_v0  ;;  %v63_v2 = vunpack.c.l.s8.bf16 %v59_v1  ;;  %v64_v3 = vunpack.c.h.s8.bf16 %v59_v1  ;;  %v65_v5 = vunpack.c.l.s8.bf16 %v60_v4  ;;  %v66_v6 = vunpack.c.h.s8.bf16 %v60_v4  ;;  %v61_v7 = vld [vmem:[#allocation6 + $0x10] sm:$0xff]  ;;  %v54_v9 = vld [vmem:[#allocation3] sm:$0xff] }
  0x28   :  { %235 = vmatprep.mubr.msk.bf16.mxu0 %vm346_vm0, %v345_v0  ;;  %255 = vmatprep.mubr.msk.bf16.mxu1 %vm346_vm0, %v345_v0  ;;  %v67_v8 = vunpack.c.l.s8.bf16 %v61_v7  ;;  %v55_v10 = vpack.c.bf16 %v54_v9, %v54_v9  ;;  %v68_v11 = vunpack.c.h.s8.bf16 %v61_v7  ;;  %v62_v12 = vld [vmem:[#allocation6 + $0x18] sm:$0xff]  ;;  %v170_v26 = vshrl.u32 %v169_v24, 7 }
  0x29   :  { %220 = vmatpush3.bf16.msra.mxu0 %v63_v2  ;;  %240 = vmatpush3.bf16.msra.mxu1 %v63_v2  ;;  %v69_v14 = vunpack.c.l.s8.bf16 %v62_v12  ;;  %v70_v16 = vunpack.c.h.s8.bf16 %v62_v12  ;;  %v158_v18 = vld [vmem:[%s432_s2] sm:$0x1]  ;;  %s347_s2 = smov [#allocation8]  }
  0x2a   :  { %221 = vmatprep.subr.bf16.mxu0 %v345_v0  ;;  %241 = vmatprep.subr.bf16.mxu1 %v345_v0  ;;  %v56_v13 = vunpack.c.l.bf16 %v55_v10  ;;  %v160_v20 = vmul.f32 %v159_v19, %v158_v18  ;;  %v161_v22 = vld [vmem:[%s433_s3] sm:$0x1]  ;;  %v171_v28 = vsub.s32 0, %v170_v26  ;;  %s190_s3 = sshll.u32 %s347_s2, 4  ;;  %s191_s3 = int_to_ptr.vmem [resolvable:$true] %s190_s3 }
  0x2b   :  { %s313_s4 = scalar_lea.vmem %s191_s3, 128  ;;  %p318_p3 = scmp.lt.s32.totalorder %s191_s3, %s191_s3 }
  0x2c   :  { %v57_v15 = vsub.f32 %v54_v9, %v56_v13  ;;  %267 = vrcp.f32 %v160_v20  ;;  %v172_v35 = vrot.slane %v158_v18, %v171_v28  ;;  %p314_p2 = scmp.ne.s32.totalorder %s191_s3, %s313_s4  ;;  %p319_p4 = scmp.lt.s32.totalorder %s313_s4, %s313_s4 }
  0x2d   :  { %222 = vmatpush3.bf16.msra.mxu0 %v64_v3  ;;  %242 = vmatpush3.bf16.msra.mxu1 %v64_v3 }
  0x2e   :  { %223 = vmatprep.subr.bf16.mxu0 %v345_v0  ;;  %243 = vmatprep.subr.bf16.mxu1 %v345_v0  ;;  %v58_v17 = vpack.c.bf16 %v57_v15, %v57_v15  ;;  %p320_p5 = por %p319_p4, %p318_p3 }
  0x30   :  { %p321_p6 = pnand %p320_p5, %p314_p2 }
  0x31   :  { %224 = vmatpush3.bf16.msra.mxu0 %v65_v5  ;;  %244 = vmatpush3.bf16.msra.mxu1 %v65_v5 }
  0x32   :  { %225 = vmatprep.subr.bf16.mxu0 %v345_v0  ;;  %245 = vmatprep.subr.bf16.mxu1 %v345_v0 }
  0x35   :  { %226 = vmatpush3.bf16.msra.mxu0 %v66_v6  ;;  %246 = vmatpush3.bf16.msra.mxu1 %v66_v6 }
  0x36   :  { %227 = vmatprep.subr.bf16.mxu0 %v345_v0  ;;  %247 = vmatprep.subr.bf16.mxu1 %v345_v0  ;;  %v268_v21 = vpop.eup %267 }
  0x37   :  { %v163_v23 = vmul.f32 %v268_v21, %v161_v22 }
  0x39   :  { %228 = vmatpush3.bf16.msra.mxu0 %v67_v8  ;;  %248 = vmatpush3.bf16.msra.mxu1 %v67_v8  ;;  %v259_v25 = vround.rtne.f32 %v163_v23 }
  0x3a   :  { %229 = vmatprep.subr.bf16.mxu0 %v345_v0  ;;  %249 = vmatprep.subr.bf16.mxu1 %v345_v0 }
  0x3b   :  { %v200_v27 = vclamps-f32 %v259_v25, 2.1474836e+09 }
  0x3d   :  { %230 = vmatpush3.bf16.msra.mxu0 %v68_v11  ;;  %250 = vmatpush3.bf16.msra.mxu1 %v68_v11  ;;  %v175_v29 = vmul.f32 %v200_v27, %v160_v20 }
  0x3e   :  { %231 = vmatprep.subr.bf16.mxu0 %v345_v0  ;;  %251 = vmatprep.subr.bf16.mxu1 %v345_v0 }
  0x3f   :  { %v180_v40 = vrot.slane %v175_v29, %v171_v28 }
  0x41   :  { %232 = vmatpush3.bf16.msra.mxu0 %v69_v14  ;;  %252 = vmatpush3.bf16.msra.mxu1 %v69_v14 }
  0x42   :  { %233 = vmatprep.subr.bf16.mxu0 %v345_v0  ;;  %253 = vmatprep.subr.bf16.mxu1 %v345_v0 }
  0x45   :  { %234 = vmatpush3.bf16.msra.mxu0 %v70_v16  ;;  %254 = vmatpush3.bf16.msra.mxu1 %v70_v16 }
  0x48   :  { %236 = vmatmul.mubr.bf16.vlgmr.msra.gmra.mrb[0].mxu0 %v58_v17  ;;  %256 = vmatmul.mubr.bf16.vlgmr.msra.gmra.mrb[0].mxu1 %v55_v10 }
 0x11b   :  { %v106_v30 = vpop.f32.mrb[0].mxu0  ;;  %v146_v31 = vpop.f32.mrb[0].mxu1 }
 0x11c   :  { %v147_v32 = vadd.f32 %v146_v31, %v106_v30  ;;  %v237_v33 = vpop.f32.mrb[1].mxu0  ;;  %v257_v34 = vpop.f32.mrb[1].mxu1 }
 0x11d   :  { %v109_v36 = vpop.f32.mrb[2].mxu0  ;;  %v149_v37 = vpop.f32.mrb[2].mxu1 }
 0x11e   :  { %v238_v38 = vpop.f32.mrb[3].mxu0  ;;  %v258_v39 = vpop.f32.mrb[3].mxu1  ;;  %v174_v41 = vmul.f32 %v172_v35, %v147_v32 }
 0x120   :  { %v182_v42 = vadd.f32 %v180_v40, %v174_v41 }
 0x122   :  { %183 = vst [vmem:[#allocation8] sm:$0xff] %v182_v42 }
 0x123   :  { %324 = shalt.err (!%p321_p6)
}
 0x124   :  { %s325_s25 = scalar_lea.hbm %s435_s5, 128 }
 0x125   :  { %p326_p7 = scmp.ne.s32.totalorder %s435_s5, %s325_s25  ;;  %p329_p8 = scmp.lt.u32.totalorder %s325_s25, %s435_s5 }
 0x127   :  { %p331_p9 = pnand %p329_p8, %p326_p7 }
 0x129   :  { %334 = shalt.err (!%p331_p9)
}
 0x12a   :  { %193 = dma.vmem_to_hbm [thread:$0]  %s191_s3, 128, %s435_s5, [#allocation5]  }
 0x12b   :  { %339 = dma.done.wait [#allocation5], 128  }
 0x12c   :  { %340 = vsyncadd [#allocation5], 4294967168 }
 0x12d   :  { %197 = vsyncpa [#allocation4], 1 }
 0x12e   :  { %198 = vsyncpa [#allocation7], 1 }
 0x12f   :  { %199 = vsyncpa [#allocation5], 1 }

</bundles_post_ra>
